<compile_context>
chip_gen: v6e
topology: v6e:2x2x1
jax: 0.10.0
libtpu: 0.0.40
codegen_flags: <defaults>
</compile_context>

<pallas_src>
import functools

import jax
import jax.numpy as jnp
from jax.experimental import pallas as pl
from jax.experimental.pallas import tpu as pltpu


# ---------------------------------------------------------------------------
# Kernel 1: direct module semantics — normalize over the LAST axis of (M, C).
# ---------------------------------------------------------------------------
def _wbln_lastdim_kernel(x_ref, w_ref, b_ref, o_ref, *, inv_c: float, eps: float):
    # x_ref: (TM, C); each row is normalized independently over C (lane axis).
    x = x_ref[...].astype(jnp.float32)                       # (TM, C)
    mu = jnp.sum(x, axis=-1, keepdims=True) * inv_c          # (TM, 1)
    xc = x - mu
    var = jnp.sum(xc * xc, axis=-1, keepdims=True) * inv_c   # unbiased=False
    inv = jax.lax.rsqrt(var + eps)                           # (TM, 1)
    w = w_ref[...].astype(jnp.float32)                       # (1, C)
    b = b_ref[...].astype(jnp.float32)                       # (1, C)
    o_ref[...] = (xc * inv * w + b).astype(o_ref.dtype)


def withbias_layernorm(x, weight, bias, *, eps=1e-5,
                       max_block_bytes=2 * 1024 * 1024):
    """Exact WithBias_LayerNorm.forward: x shape (..., C), normalize last dim."""
    *lead, c = x.shape
    m = 1
    for d in lead:
        m *= d
    x2 = x.reshape(m, c)

    itemsize = jnp.dtype(x.dtype).itemsize
    tm = max(8, (max_block_bytes // max(1, c * itemsize)) // 8 * 8)
    tm = min(m, tm) if m >= 8 else m          # full extent if tiny
    gm = pl.cdiv(m, tm)

    kernel = functools.partial(_wbln_lastdim_kernel, inv_c=1.0 / c, eps=eps)
    y2 = pl.pallas_call(
        kernel,
        out_shape=jax.ShapeDtypeStruct((m, c), x.dtype),
        grid_spec=pltpu.PrefetchScalarGridSpec(
            num_scalar_prefetch=0,
            grid=(gm,),
            in_specs=[
                pl.BlockSpec((tm, c), lambda i: (i, 0)),
                pl.BlockSpec((1, c), lambda i: (0, 0)),
                pl.BlockSpec((1, c), lambda i: (0, 0)),
            ],
            out_specs=pl.BlockSpec((tm, c), lambda i: (i, 0)),
        ),
        compiler_params=pltpu.CompilerParams(
            dimension_semantics=("parallel",),
        ),
    )(x2, weight.reshape(1, c), bias.reshape(1, c))
    return y2.reshape(*lead, c)


# ---------------------------------------------------------------------------
# Kernel 2: fused Restormer usage — to_4d(WithBias_LayerNorm(to_3d(x)), h, w)
# computed directly in NCHW layout (lane-dense over H*W, no transposes).
# ---------------------------------------------------------------------------
def _wbln_nchw_kernel(x_ref, w_ref, b_ref, o_ref, *, inv_c: float, eps: float):
    # x_ref: (1, C, TN); each lane (spatial position) is normalized over C.
    x = x_ref[...].astype(jnp.float32)                       # (1, C, TN)
    mu = jnp.sum(x, axis=1, keepdims=True) * inv_c           # (1, 1, TN)
    xc = x - mu
    var = jnp.sum(xc * xc, axis=1, keepdims=True) * inv_c    # unbiased=False
    inv = jax.lax.rsqrt(var + eps)                           # (1, 1, TN)
    w = w_ref[...].astype(jnp.float32)[None]                 # (1, C, 1)
    b = b_ref[...].astype(jnp.float32)[None]                 # (1, C, 1)
    o_ref[...] = (xc * (inv * w) + b).astype(o_ref.dtype)


def _pick_tile_n(hw: int, c: int, itemsize: int, max_block_bytes: int) -> int:
    """Lane-axis tile: full extent if it fits, else a multiple of 128 sized so
    one (1, C, TN) block stays under `max_block_bytes`."""
    max_tn = max(128, max_block_bytes // max(1, c * itemsize))
    max_tn = (max_tn // 128) * 128
    if hw <= max_tn:
        return hw                     # full extent satisfies divisibility rule
    return max_tn                     # multiple of 128; tail via cdiv grid


def layernorm_nchw(x, weight, bias, *, eps=1e-5,
                   max_block_bytes=2 * 1024 * 1024):
    b, c, h, w = x.shape
    hw = h * w
    x3 = x.reshape(b, c, hw)          # metadata-only reshape

    tn = _pick_tile_n(hw, c, jnp.dtype(x.dtype).itemsize, max_block_bytes)
    gn = pl.cdiv(hw, tn)

    kernel = functools.partial(_wbln_nchw_kernel, inv_c=1.0 / c, eps=eps)
    y3 = pl.pallas_call(
        kernel,
        out_shape=jax.ShapeDtypeStruct((b, c, hw), x.dtype),
        grid_spec=pltpu.PrefetchScalarGridSpec(
            num_scalar_prefetch=0,
            grid=(b, gn),
            in_specs=[
                pl.BlockSpec((1, c, tn), lambda bi, ni: (bi, 0, ni)),
                pl.BlockSpec((c, 1), lambda bi, ni: (0, 0)),
                pl.BlockSpec((c, 1), lambda bi, ni: (0, 0)),
            ],
            out_specs=pl.BlockSpec((1, c, tn), lambda bi, ni: (bi, 0, ni)),
        ),
        compiler_params=pltpu.CompilerParams(
            dimension_semantics=("parallel", "parallel"),
        ),
    )(x3, weight.reshape(c, 1), bias.reshape(c, 1))
    return y3.reshape(b, c, h, w)


# ---------------------------------------------------------------------------
# Pure-JAX references
# ---------------------------------------------------------------------------
def _reference_lastdim(x, weight, bias, eps=1e-5):
    x32 = x.astype(jnp.float32)
    mu = jnp.mean(x32, axis=-1, keepdims=True)
    var = jnp.mean((x32 - mu) ** 2, axis=-1, keepdims=True)
    return ((x32 - mu) / jnp.sqrt(var + eps) * weight + bias).astype(x.dtype)


def _reference_nchw(x, weight, bias, eps=1e-5):
    b, c, h, w = x.shape
    x3d = jnp.transpose(x, (0, 2, 3, 1)).reshape(b, h * w, c)
    y = _reference_lastdim(x3d, weight, bias, eps)
    return jnp.transpose(y.reshape(b, h, w, c), (0, 3, 1, 2))


if __name__ == "__main__":
    key = jax.random.PRNGKey(0)
    k1, k2, k3, k4, k5, k6 = jax.random.split(key, 6)

    # --- 1) Direct module forward: x (batch, seq, hidden) = (2, 8, 32) -------
    B, N, C = 2, 8, 32
    x3 = jax.random.normal(k1, (B, N, C), dtype=jnp.float32)
    # Module init is weight=ones, bias=zeros; perturb so the affine path is
    # actually exercised.
    w3 = jnp.ones((C,), jnp.float32) + 0.1 * jax.random.normal(k2, (C,), jnp.float32)
    b3 = 0.1 * jax.random.normal(k3, (C,), jnp.float32)

    ln = jax.jit(withbias_layernorm)
    out3 = jax.block_until_ready(ln(x3, w3, b3))
    ref3 = _reference_lastdim(x3, w3, b3)
    assert out3.shape == (B, N, C)
    assert jnp.max(jnp.abs(out3 - ref3)) < 5e-4

    # --- 2) Fused NCHW path (to_3d -> LN -> to_4d), x = (2, 4, 16, 16) -------
    Bn, Cn, H, W = 2, 4, 16, 16
    xn = jax.random.normal(k4, (Bn, Cn, H, W), dtype=jnp.float32)
    wn = jnp.ones((Cn,), jnp.float32) + 0.1 * jax.random.normal(k5, (Cn,), jnp.float32)
    bn = 0.1 * jax.random.normal(k6, (Cn,), jnp.float32)

    ln_nchw = jax.jit(layernorm_nchw)
    outn = jax.block_until_ready(ln_nchw(xn, wn, bn))
    refn = _reference_nchw(xn, wn, bn)
    assert outn.shape == (Bn, Cn, H, W)
    assert jnp.max(jnp.abs(outn - refn)) < 5e-4

    # --- 3) Restormer-typical channel count, non-trivial tail handling -------
    C2, H2, W2 = 48, 24, 24
    x2 = jax.random.normal(k1, (1, C2, H2, W2), dtype=jnp.float32)
    w2 = jnp.ones((C2,), jnp.float32) + 0.1 * jax.random.normal(k2, (C2,), jnp.float32)
    b2 = 0.1 * jnp.arange(C2, dtype=jnp.float32)
    out2 = jax.block_until_ready(ln_nchw(x2, w2, b2))
    ref2 = _reference_nchw(x2, w2, b2)
    assert jnp.max(jnp.abs(out2 - ref2)) < 5e-4

    print("KERNEL_OK")
</pallas_src>

<mosaic_0001>
module attributes {stable_mosaic.version = 11 : i64} {
  func.func @_wbln_lastdim_kernel(%arg0: i32, %arg1: memref<16x32xf32, #tpu.memory_space<vmem>>, %arg2: memref<1x32xf32, #tpu.memory_space<vmem>>, %arg3: memref<1x32xf32, #tpu.memory_space<vmem>>, %arg4: memref<16x32xf32, #tpu.memory_space<vmem>>) attributes {dimension_semantics = [#tpu.dimension_semantics<parallel>], iteration_bounds = array<i64: 1>, scalar_prefetch = 0 : i64, scratch_operands = 0 : i64, tpu.core_type = #tpu.core_type<tc>, window_params = [{transform_indices = @transform_0, window_bounds = array<i64: 16, 32>}, {pipeline_mode = #tpu.pipeline_mode<synchronous>, transform_indices = @transform_1, window_bounds = array<i64: 1, 32>}, {pipeline_mode = #tpu.pipeline_mode<synchronous>, transform_indices = @transform_2, window_bounds = array<i64: 1, 32>}, {transform_indices = @transform_3, window_bounds = array<i64: 16, 32>}]} {
    %c0 = arith.constant 0 : index
    %c0_0 = arith.constant 0 : index
    %0 = vector.load %arg1[%c0, %c0_0] : memref<16x32xf32, #tpu.memory_space<vmem>>, vector<16x32xf32>
    %cst = arith.constant dense<0.000000e+00> : vector<16xf32>
    %1 = vector.multi_reduction <add>, %0, %cst [1] : vector<16x32xf32> to vector<16xf32>
    %2 = vector.shape_cast %1 : vector<16xf32> to vector<16x1xf32>
    %cst_1 = arith.constant 3.125000e-02 : f32
    %3 = vector.broadcast %cst_1 : f32 to vector<16x1xf32>
    %4 = arith.mulf %2, %3 : vector<16x1xf32>
    %5 = vector.broadcast %4 : vector<16x1xf32> to vector<16x32xf32>
    %6 = arith.subf %0, %5 : vector<16x32xf32>
    %7 = arith.mulf %6, %6 : vector<16x32xf32>
    %cst_2 = arith.constant dense<0.000000e+00> : vector<16xf32>
    %8 = vector.multi_reduction <add>, %7, %cst_2 [1] : vector<16x32xf32> to vector<16xf32>
    %9 = vector.shape_cast %8 : vector<16xf32> to vector<16x1xf32>
    %cst_3 = arith.constant 3.125000e-02 : f32
    %10 = vector.broadcast %cst_3 : f32 to vector<16x1xf32>
    %11 = arith.mulf %9, %10 : vector<16x1xf32>
    %cst_4 = arith.constant 9.99999974E-6 : f32
    %12 = vector.broadcast %cst_4 : f32 to vector<16x1xf32>
    %13 = arith.addf %11, %12 : vector<16x1xf32>
    %14 = math.rsqrt %13 : vector<16x1xf32>
    %c0_5 = arith.constant 0 : index
    %c0_6 = arith.constant 0 : index
    %15 = vector.load %arg2[%c0_5, %c0_6] : memref<1x32xf32, #tpu.memory_space<vmem>>, vector<1x32xf32>
    %c0_7 = arith.constant 0 : index
    %c0_8 = arith.constant 0 : index
    %16 = vector.load %arg3[%c0_7, %c0_8] : memref<1x32xf32, #tpu.memory_space<vmem>>, vector<1x32xf32>
    %17 = vector.broadcast %14 : vector<16x1xf32> to vector<16x32xf32>
    %18 = arith.mulf %6, %17 : vector<16x32xf32>
    %19 = vector.broadcast %15 : vector<1x32xf32> to vector<16x32xf32>
    %20 = arith.mulf %18, %19 : vector<16x32xf32>
    %21 = vector.broadcast %16 : vector<1x32xf32> to vector<16x32xf32>
    %22 = arith.addf %20, %21 : vector<16x32xf32>
    %c0_9 = arith.constant 0 : index
    %c0_10 = arith.constant 0 : index
    %23 = vector.load %arg4[%c0_9, %c0_10] : memref<16x32xf32, #tpu.memory_space<vmem>>, vector<16x32xf32>
    tpu.vector_store %arg4[%c0_9, %c0_10], %22 {strides = array<i32>} : memref<16x32xf32, #tpu.memory_space<vmem>>, vector<16x32xf32>,
    return
  }
  func.func @transform_0(%arg0: i32) -> (i32, i32) {
    %c0_i32 = arith.constant 0 : i32
    %c0_i32_0 = arith.constant 0 : i32
    return %arg0, %c0_i32 : i32, i32
  }
  func.func @transform_1(%arg0: i32) -> (i32, i32) {
    %c0_i32 = arith.constant 0 : i32
    %c0_i32_0 = arith.constant 0 : i32
    %c0_i32_1 = arith.constant 0 : i32
    return %c0_i32, %c0_i32_0 : i32, i32
  }
  func.func @transform_2(%arg0: i32) -> (i32, i32) {
    %c0_i32 = arith.constant 0 : i32
    %c0_i32_0 = arith.constant 0 : i32
    %c0_i32_1 = arith.constant 0 : i32
    return %c0_i32, %c0_i32_0 : i32, i32
  }
  func.func @transform_3(%arg0: i32) -> (i32, i32) {
    %c0_i32 = arith.constant 0 : i32
    %c0_i32_0 = arith.constant 0 : i32
    return %arg0, %c0_i32 : i32, i32
  }
}

</mosaic_0001>

<bundles_post_ra>
// kernel: withbias_layernorm.1
= control target key start
LH: loop header
LB: loop body
LE: loop exit
PB: predicated region body
PF: predicated region fallthrough
CT: control target
= control target key end

     0   :  { %8 = vsyncpa [#allocation3], 0  ;;  %s197_s0 = inlined_call_operand.hbm [shape: f32[16,32], index: 0, kind: input, shape index: {}]   ;;  %s198_s1 = inlined_call_operand.vmem [shape: f32[1,32], index: 1, kind: input, shape index: {}]   ;;  %s199_s2 = inlined_call_operand.vmem [shape: f32[1,32], index: 2, kind: input, shape index: {}]   ;;  %s200_s3 = inlined_call_operand.hbm [shape: f32[16,32], index: 3, kind: output, shape index: {}]  }
   0x1   :  { %9 = vsyncpa [#allocation4], 0  ;;  %s149_s12 = smov [#allocation2]  }
   0x2   :  { %s15_s13 = sshll.u32 %s149_s12, 4  ;;  %s16_s13 = int_to_ptr.vmem [resolvable:$true] %s15_s13 }
   0x3   :  { %s113_s14 = scalar_lea.vmem %s16_s13, 256  ;;  %p118_p1 = scmp.lt.s32.totalorder %s16_s13, %s16_s13 }
   0x4   :  { %p114_p0 = scmp.ne.s32.totalorder %s16_s13, %s113_s14  ;;  %p119_p2 = scmp.lt.s32.totalorder %s113_s14, %s113_s14 }
   0x6   :  { %p120_p3 = por %p119_p2, %p118_p1 }
   0x8   :  { %p121_p4 = pnand %p120_p3, %p114_p0 }
   0xa   :  { %124 = shalt.err (!%p121_p4)
}
   0xb   :  { %s150_s15 = smov 128   ;;  %s151_s16 = smov 8  }
   0xc   :  { %21 = dma.hbm_to_vmem [thread:$0]  %s197_s0, 256, %s16_s13, [#allocation3], %s150_s15, %s150_s15, %s151_s16  }
   0xd   :  { %145 = dma.done.wait [#allocation3], 256  }
   0xe   :  { %146 = vsyncadd [#allocation3], 4294967040  ;;  %vm31_vm0 = vcmask 261120   ;;  %v29_v0 = vld [vmem:[#allocation2] sm:$0xff]  ;;  %v30_v1 = vld [vmem:[#allocation2 + $0x8] sm:$0xff]  ;;  %s152_s22 = smov [#allocation5]  }
   0xf   :  { %v32_v2 = vsel %vm31_vm0, %v29_v0, 0.0  ;;  %v35_v3 = vsel %vm31_vm0, %v30_v1, 0.0  ;;  %v95_v21 = vld [vmem:[%s198_s1] ss:$0 sm:$0xff]  ;;  %s83_s23 = sshll.u32 %s152_s22, 4  ;;  %s84_s23 = int_to_ptr.vmem [resolvable:$true] %s83_s23 }
  0x10   :  { %33 = vadd.xlane.f32.xlu0 %v32_v2  ;;  %v96_v23 = vld [vmem:[%s199_s2] ss:$0 sm:$0xff]  ;;  %s125_s24 = scalar_lea.vmem %s84_s23, 256  ;;  %p130_p6 = scmp.lt.s32.totalorder %s84_s23, %s84_s23 }
  0x11   :  { %p126_p5 = scmp.ne.s32.totalorder %s84_s23, %s125_s24  ;;  %p131_p7 = scmp.lt.s32.totalorder %s125_s24, %s125_s24 }
  0x13   :  { %p132_p8 = por %p131_p7, %p130_p6 }
  0x14   :  { %36 = vadd.xlane.f32.xlu0 %v35_v3 }
  0x15   :  { %p133_p9 = pnand %p132_p8, %p126_p5 }
  0x99   :  { %v34_v4 = vpop.xlane.xlu0 %33 }
  0x9a   :  { %v38_v5 = vmul.f32 0.03125, %v34_v4 }
  0x9c   :  { %v40_v6 = vsub.f32 %v29_v0, %v38_v5 }
  0x9d   :  { %v37_v7 = vpop.xlane.xlu0 %36 }
  0x9e   :  { %v39_v8 = vmul.f32 0.03125, %v37_v7  ;;  %v42_v9 = vmul.f32 %v40_v6, %v40_v6 }
  0xa0   :  { %v41_v10 = vsub.f32 %v30_v1, %v39_v8  ;;  %v44_v11 = vsel %vm31_vm0, %v42_v9, 0.0 }
  0xa1   :  { %45 = vadd.xlane.f32.xlu1 %v44_v11 }
  0xa2   :  { %v43_v12 = vmul.f32 %v41_v10, %v41_v10 }
  0xa4   :  { %v47_v13 = vsel %vm31_vm0, %v43_v12, 0.0 }
  0xa5   :  { %48 = vadd.xlane.f32.xlu1 %v47_v13 }
 0x12a   :  { %v46_v14 = vpop.xlane.xlu1 %45 }
 0x12b   :  { %v50_v15 = vmul.f32 0.03125, %v46_v14 }
 0x12d   :  { %v52_v16 = vadd.f32 1e-05, %v50_v15 }
 0x12e   :  { %v49_v17 = vpop.xlane.xlu1 %48 }
 0x12f   :  { %101 = vrsqrt.f32 %v52_v16  ;;  %v51_v18 = vmul.f32 0.03125, %v49_v17 }
 0x131   :  { %v53_v19 = vadd.f32 1e-05, %v51_v18 }
 0x133   :  { %103 = vrsqrt.f32 %v53_v19 }
 0x13c   :  { %v102_v20 = vpop.eup %101 }
 0x13d   :  { %v58_v22 = vmul.f32 %v102_v20, %v40_v6 }
 0x13f   :  { %v66_v24 = vmul.f32 %v95_v21, %v58_v22 }
 0x140   :  { %v104_v25 = vpop.eup %103 }
 0x141   :  { %v59_v26 = vmul.f32 %v104_v25, %v41_v10  ;;  %v74_v27 = vadd.f32 %v96_v23, %v66_v24 }
 0x143   :  { %v67_v28 = vmul.f32 %v95_v21, %v59_v26  ;;  %76 = vst.msk [vmem:[#allocation5] sm:$0xff] %vm31_vm0, %v74_v27 }
 0x145   :  { %v75_v29 = vadd.f32 %v96_v23, %v67_v28 }
 0x147   :  { %77 = vst.msk [vmem:[#allocation5 + $0x8] sm:$0xff] %vm31_vm0, %v75_v29 }
 0x148   :  { %136 = shalt.err (!%p133_p9)
}
 0x149   :  { %89 = dma.vmem_to_hbm [thread:$0]  %s84_s23, 256, %s200_s3, [#allocation4], %s150_s15, %s150_s15, %s151_s16  }
 0x14a   :  { %147 = dma.done.wait [#allocation4], 256  }
 0x14b   :  { %148 = vsyncadd [#allocation4], 4294967040 }
 0x14c   :  { %93 = vsyncpa [#allocation3], 1 }
 0x14d   :  { %94 = vsyncpa [#allocation4], 1 }

</bundles_post_ra>
